<compile_context>
chip_gen: v6e
topology: v6e:2x2x1
jax: 0.10.0
libtpu: 0.0.40
codegen_flags: <defaults>
</compile_context>

<pallas_src>
import functools

import jax
import jax.numpy as jnp
from jax.experimental import pallas as pl
from jax.experimental.pallas import tpu as pltpu


def _dw_dec_block_kernel(x_ref, w1_ref, b1_ref, m_ref, wdw_ref, b2_ref, o_ref,
                         *, kk, n):
    """One batch element.

    x_ref:   (C_in, H*W)       input activations (batch dim squeezed by BlockSpec)
    w1_ref:  (C_out, C_in)     1x1 conv weight, BN1 scale folded in
    b1_ref:  (C_out, 1)        1x1 conv bias,   BN1 folded in
    m_ref:   (H*W, K*K*N)      0/1 upsample+shift+pad matrix, taps concatenated on lanes
    wdw_ref: (C_out, K*K)      depthwise taps,  BN2 scale folded in
    b2_ref:  (C_out, 1)        depthwise bias,  BN2 folded in
    o_ref:   (C_out, N)        output, N = (H*s)*(W*s)
    """
    f32 = jnp.float32
    x = x_ref[...].astype(f32)                                 # (C_in, HW)
    w1 = w1_ref[...].astype(f32)                               # (C_out, C_in)

    # ---- 1x1 conv (+folded BN1) + ReLU: channel contraction on the MXU.
    y = jnp.dot(w1, x, preferred_element_type=f32)             # (C_out, HW)
    y = jnp.maximum(y + b1_ref[...].astype(f32), 0.0)

    # ---- Nearest upsample + per-tap shift + zero halo pad: one 0/1 MXU matmul.
    z = jnp.dot(y, m_ref[...].astype(f32),
                preferred_element_type=f32)                    # (C_out, K*K*N)

    # ---- Depthwise accumulation: per-channel tap weights x lane-aligned slices.
    wdw = wdw_ref[...].astype(f32)                             # (C_out, K*K)
    acc = wdw[:, 0:1] * z[:, 0:n]
    for t in range(1, kk):
        acc = acc + wdw[:, t:t + 1] * z[:, t * n:(t + 1) * n]

    out = jnp.maximum(acc + b2_ref[...].astype(f32), 0.0)
    o_ref[...] = out.astype(o_ref.dtype)


def depthwise_conv_dec_block(x, w1, b1, g1, be1, m1, v1,
                             wdw, bdw, g2, be2, m2, v2,
                             *, stride, eps=1e-5):
    """x: (B, C_in, H, W) NCHW. w1: (C_out, C_in, 1, 1). wdw: (C_out, 1, K, K).
    BN params/buffers are per-channel (C_out,). Returns (B, C_out, H*s, W*s)."""
    B, C_in, H, W = x.shape
    C_out = w1.shape[0]
    assert C_out == C_in, "depthwise path requires out_channels == in_channels"
    K = wdw.shape[-1]
    s = stride
    Hs, Ws = H * s, W * s
    HW = H * W
    N = Hs * Ws
    KK = K * K
    p = K // 2

    # ---- Fold BatchNorms (inference mode) into the convs — params only.
    s1 = g1 * jax.lax.rsqrt(v1 + eps)
    w1f = (w1.reshape(C_out, C_in) * s1[:, None]).astype(jnp.float32)
    b1f = ((b1 - m1) * s1 + be1).astype(jnp.float32).reshape(C_out, 1)
    s2 = g2 * jax.lax.rsqrt(v2 + eps)
    wdwf = (wdw.reshape(C_out, KK) * s2[:, None]).astype(jnp.float32)
    b2f = ((bdw - m2) * s2 + be2).astype(jnp.float32).reshape(C_out, 1)

    # ---- Per-tap (nearest-upsample ∘ shift ∘ zero-pad) 0/1 matrices (HW, N),
    #      concatenated on the lane axis -> (HW, KK*N): one matmul in-kernel.
    oh = jnp.arange(Hs)
    ow = jnp.arange(Ws)
    src_rows = jnp.arange(HW)[:, None]                          # (HW, 1)
    mats = []
    for dy in range(K):
        for dx in range(K):
            ih = oh + (dy - p)                                  # upsampled row read
            iw = ow + (dx - p)                                  # upsampled col read
            valid = (((ih >= 0) & (ih < Hs))[:, None]
                     & ((iw >= 0) & (iw < Ws))[None, :])        # (Hs, Ws) halo mask
            src = ((jnp.clip(ih, 0, Hs - 1) // s)[:, None] * W
                   + (jnp.clip(iw, 0, Ws - 1) // s)[None, :])   # source input pixel
            sel = (src_rows == src.reshape(1, N)) & valid.reshape(1, N)
            mats.append(sel.astype(jnp.float32))
    m_all = jnp.concatenate(mats, axis=1)                       # (HW, KK*N)

    x2 = x.reshape(B, C_in, HW)        # free contiguous reshape, spatial on lanes

    kernel = functools.partial(_dw_dec_block_kernel, kk=KK, n=N)
    out = pl.pallas_call(
        kernel,
        out_shape=jax.ShapeDtypeStruct((B, C_out, N), x.dtype),
        grid=(B,),
        in_specs=[
            pl.BlockSpec((None, C_in, HW), lambda b: (b, 0, 0)),
            pl.BlockSpec((C_out, C_in), lambda b: (0, 0)),
            pl.BlockSpec((C_out, 1), lambda b: (0, 0)),
            pl.BlockSpec((HW, KK * N), lambda b: (0, 0)),
            pl.BlockSpec((C_out, KK), lambda b: (0, 0)),
            pl.BlockSpec((C_out, 1), lambda b: (0, 0)),
        ],
        out_specs=pl.BlockSpec((None, C_out, N), lambda b: (b, 0, 0)),
        compiler_params=pltpu.CompilerParams(
            dimension_semantics=("parallel",)),
    )(x2, w1f, b1f, m_all, wdwf, b2f)
    return out.reshape(B, C_out, Hs, Ws)


def reference(x, w1, b1, g1, be1, m1, v1, wdw, bdw, g2, be2, m2, v2,
              *, stride, eps=1e-5):
    """Pure-JAX replica of the PyTorch forward (BN in eval mode)."""
    C_out = w1.shape[0]
    K = wdw.shape[-1]
    p = K // 2
    y = jnp.einsum("oc,bchw->bohw", w1.reshape(C_out, -1), x) + b1[None, :, None, None]
    y = (y - m1[None, :, None, None]) * (g1 * jax.lax.rsqrt(v1 + eps))[None, :, None, None] \
        + be1[None, :, None, None]
    y = jnp.maximum(y, 0.0)
    y = jnp.repeat(jnp.repeat(y, stride, axis=2), stride, axis=3)
    z = jax.lax.conv_general_dilated(
        y, wdw, window_strides=(1, 1), padding=[(p, p), (p, p)],
        dimension_numbers=("NCHW", "OIHW", "NCHW"),
        feature_group_count=C_out)
    z = z + bdw[None, :, None, None]
    z = (z - m2[None, :, None, None]) * (g2 * jax.lax.rsqrt(v2 + eps))[None, :, None, None] \
        + be2[None, :, None, None]
    return jnp.maximum(z, 0.0)


if __name__ == "__main__":
    # in_channels = out_channels = 4, stride = 2, kernel_size = 3, batch = 2,
    # input spatial 8x8 -> output spatial 16x16.
    B, C_in, C_out, H, W = 2, 4, 4, 8, 8
    stride, K = 2, 3

    key = jax.random.PRNGKey(0)
    ks = jax.random.split(key, 13)
    x = jax.random.normal(ks[0], (B, C_in, H, W), jnp.float32)

    w1 = jax.random.normal(ks[1], (C_out, C_in, 1, 1), jnp.float32) * 0.3
    b1 = jax.random.normal(ks[2], (C_out,), jnp.float32) * 0.1
    g1 = 1.0 + 0.1 * jax.random.normal(ks[3], (C_out,), jnp.float32)
    be1 = 0.1 * jax.random.normal(ks[4], (C_out,), jnp.float32)
    m1 = 0.1 * jax.random.normal(ks[5], (C_out,), jnp.float32)
    v1 = 0.9 + 0.2 * jax.random.uniform(ks[6], (C_out,), jnp.float32)

    wdw = jax.random.normal(ks[7], (C_out, 1, K, K), jnp.float32) * 0.3
    bdw = jax.random.normal(ks[8], (C_out,), jnp.float32) * 0.1
    g2 = 1.0 + 0.1 * jax.random.normal(ks[9], (C_out,), jnp.float32)
    be2 = 0.1 * jax.random.normal(ks[10], (C_out,), jnp.float32)
    m2 = 0.1 * jax.random.normal(ks[11], (C_out,), jnp.float32)
    v2 = 0.9 + 0.2 * jax.random.uniform(ks[12], (C_out,), jnp.float32)

    out = depthwise_conv_dec_block(x, w1, b1, g1, be1, m1, v1,
                                   wdw, bdw, g2, be2, m2, v2, stride=stride)
    out = jax.block_until_ready(out)

    ref = reference(x, w1, b1, g1, be1, m1, v1,
                    wdw, bdw, g2, be2, m2, v2, stride=stride)

    assert out.shape == (B, C_out, H * stride, W * stride)
    assert jnp.allclose(out, ref, atol=1e-4, rtol=1e-4), \
        f"max abs diff {jnp.max(jnp.abs(out - ref))}"
    print("KERNEL_OK")
</pallas_src>

<mosaic_0001>
module attributes {stable_mosaic.version = 11 : i64} {
  func.func @_dw_dec_block_kernel(%arg0: i32, %arg1: memref<1x4x64xf32, #tpu.memory_space<vmem>>, %arg2: memref<4x4xf32, #tpu.memory_space<vmem>>, %arg3: memref<4x1xf32, #tpu.memory_space<vmem>>, %arg4: memref<64x2304xf32, #tpu.memory_space<vmem>>, %arg5: memref<4x9xf32, #tpu.memory_space<vmem>>, %arg6: memref<4x1xf32, #tpu.memory_space<vmem>>, %arg7: memref<1x4x256xf32, #tpu.memory_space<vmem>>) attributes {dimension_semantics = [#tpu.dimension_semantics<parallel>], iteration_bounds = array<i64: 2>, scalar_prefetch = 0 : i64, scratch_operands = 0 : i64, tpu.core_type = #tpu.core_type<tc>, window_params = [{transform_indices = @transform_0, window_bounds = array<i64: 1, 4, 64>}, {pipeline_mode = #tpu.pipeline_mode<synchronous>, transform_indices = @transform_1, window_bounds = array<i64: 4, 4>}, {pipeline_mode = #tpu.pipeline_mode<synchronous>, transform_indices = @transform_2, window_bounds = array<i64: 4, 1>}, {pipeline_mode = #tpu.pipeline_mode<synchronous>, transform_indices = @transform_3, window_bounds = array<i64: 64, 2304>}, {pipeline_mode = #tpu.pipeline_mode<synchronous>, transform_indices = @transform_4, window_bounds = array<i64: 4, 9>}, {pipeline_mode = #tpu.pipeline_mode<synchronous>, transform_indices = @transform_5, window_bounds = array<i64: 4, 1>}, {transform_indices = @transform_6, window_bounds = array<i64: 1, 4, 256>}]} {
    %c0 = arith.constant 0 : index
    %c0_0 = arith.constant 0 : index
    %c0_1 = arith.constant 0 : index
    %0 = vector.load %arg1[%c0, %c0_0, %c0_1] : memref<1x4x64xf32, #tpu.memory_space<vmem>>, vector<1x4x64xf32>
    %1 = vector.shape_cast %0 : vector<1x4x64xf32> to vector<4x64xf32>
    %c0_2 = arith.constant 0 : index
    %c0_3 = arith.constant 0 : index
    %2 = vector.load %arg2[%c0_2, %c0_3] : memref<4x4xf32, #tpu.memory_space<vmem>>, vector<4x4xf32>
    %cst = arith.constant dense<0.000000e+00> : vector<4x64xf32>
    %3 = tpu.matmul %2, %1, %cst {dimension_numbers = #tpu.dot_dimension_numbers<[1], [0], [0], [1], [0, 0, 1, 1], [], []>} : vector<4x4xf32>, vector<4x64xf32>, vector<4x64xf32> -> vector<4x64xf32>
    %c0_4 = arith.constant 0 : index
    %c0_5 = arith.constant 0 : index
    %4 = vector.load %arg3[%c0_4, %c0_5] : memref<4x1xf32, #tpu.memory_space<vmem>>, vector<4x1xf32>
    %5 = vector.broadcast %4 : vector<4x1xf32> to vector<4x64xf32>
    %6 = arith.addf %3, %5 : vector<4x64xf32>
    %cst_6 = arith.constant 0.000000e+00 : f32
    %7 = vector.broadcast %cst_6 : f32 to vector<4x64xf32>
    %8 = arith.maximumf %6, %7 : vector<4x64xf32>
    %c0_7 = arith.constant 0 : index
    %c0_8 = arith.constant 0 : index
    %9 = vector.load %arg4[%c0_7, %c0_8] : memref<64x2304xf32, #tpu.memory_space<vmem>>, vector<64x2304xf32>
    %cst_9 = arith.constant dense<0.000000e+00> : vector<4x2304xf32>
    %10 = tpu.matmul %8, %9, %cst_9 {dimension_numbers = #tpu.dot_dimension_numbers<[1], [0], [0], [1], [0, 0, 1, 1], [], []>} : vector<4x64xf32>, vector<64x2304xf32>, vector<4x2304xf32> -> vector<4x2304xf32>
    %c0_10 = arith.constant 0 : index
    %c0_11 = arith.constant 0 : index
    %11 = vector.load %arg5[%c0_10, %c0_11] : memref<4x9xf32, #tpu.memory_space<vmem>>, vector<4x9xf32>
    %12 = vector.extract_strided_slice %11 {offsets = [0, 0], sizes = [4, 1], strides = [1, 1]} : vector<4x9xf32> to vector<4x1xf32>
    %13 = vector.extract_strided_slice %10 {offsets = [0, 0], sizes = [4, 256], strides = [1, 1]} : vector<4x2304xf32> to vector<4x256xf32>
    %14 = vector.broadcast %12 : vector<4x1xf32> to vector<4x256xf32>
    %15 = arith.mulf %14, %13 : vector<4x256xf32>
    %16 = vector.extract_strided_slice %11 {offsets = [0, 1], sizes = [4, 1], strides = [1, 1]} : vector<4x9xf32> to vector<4x1xf32>
    %17 = vector.extract_strided_slice %10 {offsets = [0, 256], sizes = [4, 256], strides = [1, 1]} : vector<4x2304xf32> to vector<4x256xf32>
    %18 = vector.broadcast %16 : vector<4x1xf32> to vector<4x256xf32>
    %19 = arith.mulf %18, %17 : vector<4x256xf32>
    %20 = arith.addf %15, %19 : vector<4x256xf32>
    %21 = vector.extract_strided_slice %11 {offsets = [0, 2], sizes = [4, 1], strides = [1, 1]} : vector<4x9xf32> to vector<4x1xf32>
    %22 = vector.extract_strided_slice %10 {offsets = [0, 512], sizes = [4, 256], strides = [1, 1]} : vector<4x2304xf32> to vector<4x256xf32>
    %23 = vector.broadcast %21 : vector<4x1xf32> to vector<4x256xf32>
    %24 = arith.mulf %23, %22 : vector<4x256xf32>
    %25 = arith.addf %20, %24 : vector<4x256xf32>
    %26 = vector.extract_strided_slice %11 {offsets = [0, 3], sizes = [4, 1], strides = [1, 1]} : vector<4x9xf32> to vector<4x1xf32>
    %27 = vector.extract_strided_slice %10 {offsets = [0, 768], sizes = [4, 256], strides = [1, 1]} : vector<4x2304xf32> to vector<4x256xf32>
    %28 = vector.broadcast %26 : vector<4x1xf32> to vector<4x256xf32>
    %29 = arith.mulf %28, %27 : vector<4x256xf32>
    %30 = arith.addf %25, %29 : vector<4x256xf32>
    %31 = vector.extract_strided_slice %11 {offsets = [0, 4], sizes = [4, 1], strides = [1, 1]} : vector<4x9xf32> to vector<4x1xf32>
    %32 = vector.extract_strided_slice %10 {offsets = [0, 1024], sizes = [4, 256], strides = [1, 1]} : vector<4x2304xf32> to vector<4x256xf32>
    %33 = vector.broadcast %31 : vector<4x1xf32> to vector<4x256xf32>
    %34 = arith.mulf %33, %32 : vector<4x256xf32>
    %35 = arith.addf %30, %34 : vector<4x256xf32>
    %36 = vector.extract_strided_slice %11 {offsets = [0, 5], sizes = [4, 1], strides = [1, 1]} : vector<4x9xf32> to vector<4x1xf32>
    %37 = vector.extract_strided_slice %10 {offsets = [0, 1280], sizes = [4, 256], strides = [1, 1]} : vector<4x2304xf32> to vector<4x256xf32>
    %38 = vector.broadcast %36 : vector<4x1xf32> to vector<4x256xf32>
    %39 = arith.mulf %38, %37 : vector<4x256xf32>
    %40 = arith.addf %35, %39 : vector<4x256xf32>
    %41 = vector.extract_strided_slice %11 {offsets = [0, 6], sizes = [4, 1], strides = [1, 1]} : vector<4x9xf32> to vector<4x1xf32>
    %42 = vector.extract_strided_slice %10 {offsets = [0, 1536], sizes = [4, 256], strides = [1, 1]} : vector<4x2304xf32> to vector<4x256xf32>
    %43 = vector.broadcast %41 : vector<4x1xf32> to vector<4x256xf32>
    %44 = arith.mulf %43, %42 : vector<4x256xf32>
    %45 = arith.addf %40, %44 : vector<4x256xf32>
    %46 = vector.extract_strided_slice %11 {offsets = [0, 7], sizes = [4, 1], strides = [1, 1]} : vector<4x9xf32> to vector<4x1xf32>
    %47 = vector.extract_strided_slice %10 {offsets = [0, 1792], sizes = [4, 256], strides = [1, 1]} : vector<4x2304xf32> to vector<4x256xf32>
    %48 = vector.broadcast %46 : vector<4x1xf32> to vector<4x256xf32>
    %49 = arith.mulf %48, %47 : vector<4x256xf32>
    %50 = arith.addf %45, %49 : vector<4x256xf32>
    %51 = vector.extract_strided_slice %11 {offsets = [0, 8], sizes = [4, 1], strides = [1, 1]} : vector<4x9xf32> to vector<4x1xf32>
    %52 = vector.extract_strided_slice %10 {offsets = [0, 2048], sizes = [4, 256], strides = [1, 1]} : vector<4x2304xf32> to vector<4x256xf32>
    %53 = vector.broadcast %51 : vector<4x1xf32> to vector<4x256xf32>
    %54 = arith.mulf %53, %52 : vector<4x256xf32>
    %55 = arith.addf %50, %54 : vector<4x256xf32>
    %c0_12 = arith.constant 0 : index
    %c0_13 = arith.constant 0 : index
    %56 = vector.load %arg6[%c0_12, %c0_13] : memref<4x1xf32, #tpu.memory_space<vmem>>, vector<4x1xf32>
    %57 = vector.broadcast %56 : vector<4x1xf32> to vector<4x256xf32>
    %58 = arith.addf %55, %57 : vector<4x256xf32>
    %cst_14 = arith.constant 0.000000e+00 : f32
    %59 = vector.broadcast %cst_14 : f32 to vector<4x256xf32>
    %60 = arith.maximumf %58, %59 : vector<4x256xf32>
    %c0_15 = arith.constant 0 : index
    %c0_16 = arith.constant 0 : index
    %c0_17 = arith.constant 0 : index
    %61 = vector.load %arg7[%c0_15, %c0_16, %c0_17] : memref<1x4x256xf32, #tpu.memory_space<vmem>>, vector<1x4x256xf32>
    %62 = vector.shape_cast %61 : vector<1x4x256xf32> to vector<4x256xf32>
    %63 = vector.shape_cast %60 : vector<4x256xf32> to vector<1x4x256xf32>
    tpu.vector_store %arg7[%c0_15, %c0_16, %c0_17], %63 {strides = array<i32>} : memref<1x4x256xf32, #tpu.memory_space<vmem>>, vector<1x4x256xf32>,
    return
  }
  func.func @transform_0(%arg0: i32) -> (i32, i32, i32) {
    %c0_i32 = arith.constant 0 : i32
    %c0_i32_0 = arith.constant 0 : i32
    %c0_i32_1 = arith.constant 0 : i32
    return %arg0, %c0_i32, %c0_i32_0 : i32, i32, i32
  }
  func.func @transform_1(%arg0: i32) -> (i32, i32) {
    %c0_i32 = arith.constant 0 : i32
    %c0_i32_0 = arith.constant 0 : i32
    %c0_i32_1 = arith.constant 0 : i32
    return %c0_i32, %c0_i32_0 : i32, i32
  }
  func.func @transform_2(%arg0: i32) -> (i32, i32) {
    %c0_i32 = arith.constant 0 : i32
    %c0_i32_0 = arith.constant 0 : i32
    %c0_i32_1 = arith.constant 0 : i32
    return %c0_i32, %c0_i32_0 : i32, i32
  }
  func.func @transform_3(%arg0: i32) -> (i32, i32) {
    %c0_i32 = arith.constant 0 : i32
    %c0_i32_0 = arith.constant 0 : i32
    %c0_i32_1 = arith.constant 0 : i32
    return %c0_i32, %c0_i32_0 : i32, i32
  }
  func.func @transform_4(%arg0: i32) -> (i32, i32) {
    %c0_i32 = arith.constant 0 : i32
    %c0_i32_0 = arith.constant 0 : i32
    %c0_i32_1 = arith.constant 0 : i32
    return %c0_i32, %c0_i32_0 : i32, i32
  }
  func.func @transform_5(%arg0: i32) -> (i32, i32) {
    %c0_i32 = arith.constant 0 : i32
    %c0_i32_0 = arith.constant 0 : i32
    %c0_i32_1 = arith.constant 0 : i32
    return %c0_i32, %c0_i32_0 : i32, i32
  }
  func.func @transform_6(%arg0: i32) -> (i32, i32, i32) {
    %c0_i32 = arith.constant 0 : i32
    %c0_i32_0 = arith.constant 0 : i32
    %c0_i32_1 = arith.constant 0 : i32
    return %arg0, %c0_i32, %c0_i32_0 : i32, i32, i32
  }
}

</mosaic_0001>

<bundles_post_ra>
// kernel: tpu_custom_call.1
= control target key start
LH: loop header
LB: loop body
LE: loop exit
PB: predicated region body
PF: predicated region fallthrough
CT: control target
= control target key end

     0   :  { %11 = vsyncpa [#allocation3], 0  ;;  %s1803_s0 = inlined_call_operand.vmem [shape: f32[2,4,64], index: 0, kind: input, shape index: {}]   ;;  %s1804_s1 = inlined_call_operand.hbm [shape: f32[4,4], index: 1, kind: input, shape index: {}]   ;;  %s1805_s2 = inlined_call_operand.vmem [shape: f32[4,1], index: 2, kind: input, shape index: {}]   ;;  %s1806_s3 = inlined_call_operand.hbm [shape: f32[64,2304], index: 3, kind: input, shape index: {}]   ;;  %s1807_s4 = inlined_call_operand.vmem [shape: f32[4,9], index: 4, kind: input, shape index: {}]   ;;  %s1808_s5 = inlined_call_operand.vmem [shape: f32[4,1], index: 5, kind: input, shape index: {}]   ;;  %s1809_s6 = inlined_call_operand.hbm [shape: f32[2,4,256], index: 6, kind: output, shape index: {}]  }
   0x1   :  { %12 = vsyncpa [#allocation6], 0 }
   0x2   :  { %13 = vsyncpa [#allocation4], 0 }
   0x3   :  { %15 = vsyncpa [#allocation4 + $0x1], 0  ;;  %s1622_s21 = smov 0   ;;  %s1624_s22 = smov 0  }
   0x4   :  { %s1626_s23 = smov 0   ;;  %s1628_s24 = smov 0  }
   0x5 LB: > { %s1643_s25 = sadd.s32 4294967295, %s1569_s24   ;;  %s1332_s26 = sadd.s32 4294967294, %s1569_s24   ;;  %s1569_s24 = sphi %s1628_s24, %s1827_s24   ;;  %s1565_s23 = sphi %s1626_s23, %s1826_s23   ;;  %s1561_s22 = sphi %s1624_s22, %s1825_s22   ;;  %s1557_s21 = sphi %s1622_s21, %s1824_s21  }
   0x6   : > { %s1647_s27 = sadd.s32 1, %s1569_s24   ;;  %s159_s28 = sadd.s32 1, %s1565_s23 }
   0x7   : > { %s156_s29 = ssub.s32 %s1569_s24, %s1647_s27  ;;  %p169_p0 = scmp.ne.s32.totalorder %s1565_s23, %s1561_s22 }
   0x8   : > { %p157_p1 = scmp.eq.s32.totalorder %s156_s29, 0  ;;  %p170_p2 = scmp.eq.s32.totalorder %s1643_s25, 1 }
   0x9   : > { %p175_p3 = scmp.ne.s32.totalorder %s1561_s22, %s1557_s21  ;;  %p176_p4 = scmp.eq.s32.totalorder %s1332_s26, 1 }
   0xa   : > { %s1658_s30 = scalar_select %p157_p1, %s1565_s23, %s159_s28  }
   0xb   : > { %p1660_p5 = por %p170_p2, %p169_p0  ;;  %p1664_p6 = por %p176_p4, %p175_p3 }
   0xc   : > { %p1333_p7 = scmp.ge.s32.totalorder %s1569_s24, 1  ;;  %p183_p8 = scmp.lt.s32.totalorder %s1569_s24, 3 }
   0xd   : > { %s1813_s7 = scalar_select %p1660_p5, 1, 0 }
   0xe   : > { %s1814_s8 = scalar_select %p1664_p6, 1, 0 }
   0xf   : > { %p1810_p9 = scmp.eq.s32.totalorder %s1643_s25, 0  ;;  %p1671_p10 = pnand %p1333_p7, %p183_p8 }
  0x10   : > { %s1571_s10 = smov [#allocation2]   ;;  %s1572_s12 = smov [#allocation5]  }
  0x11   : > { %s1815_s9 = scalar_select %p1671_p10, 1, 0 }
  0x12   : > { %s196_s11 = sshll.u32 %s1571_s10, 4  ;;  %p1376_p11 = pneg %p1671_p10  ;;  %s197_s11 = int_to_ptr.vmem [resolvable:$true] %s196_s11 }
  0x13   : > { %s209_s13 = sshll.u32 %s1572_s12, 4  ;;  %s1460_s15 = scalar_lea.vmem %s197_s11, 64  ;;  %s210_s13 = int_to_ptr.vmem [resolvable:$true] %s209_s13 }
  0x14   : > { %p1679_p12 = pnand %p1810_p9, %p1376_p11  ;;  %p1461_p0 = scmp.ne.s32.totalorder %s197_s11, %s1460_s15 }
  0x15   : > { %p1468_p3 = scmp.lt.s32.totalorder %s197_s11, %s197_s11  ;;  %p1469_p4 = scmp.lt.s32.totalorder %s1460_s15, %s1460_s15 }
  0x16   : > { %p1451_p13 = pneg %p1679_p12 }
  0x17   : > { %p1470_p7 = por %p1469_p4, %p1468_p3 }
  0x18   : > { %p1463_p1 = pnand %p1461_p0, %p1451_p13 }
  0x1a   : > { %p1464_p2 = pneg %p1463_p1 }
  0x1c   : > { %p1471_p8 = pnand %p1470_p7, %p1464_p2 }
  0x1e   : > { %1474 = shalt.err (!%p1471_p8)
}
  0x1f   : > { %1379 = dma.hbm_to_vmem [thread:$0]  (!%p1679_p12), %s1804_s1, 64, %s197_s11, [#allocation3]  }
  0x20   : > { %s1486_s18 = scalar_lea.vmem %s210_s13, 18432  ;;  %p1494_p0 = scmp.lt.s32.totalorder %s210_s13, %s210_s13 }
  0x21   : > { %p1487_p11 = scmp.ne.s32.totalorder %s210_s13, %s1486_s18  ;;  %p1495_p1 = scmp.lt.s32.totalorder %s1486_s18, %s1486_s18 }
  0x23   : > { %p1489_p9 = pnand %p1487_p11, %p1451_p13  ;;  %p1496_p5 = por %p1495_p1, %p1494_p0 }
  0x25   : > { %p1490_p6 = pneg %p1489_p9 }
  0x27   : > { %p1497_p10 = pnand %p1496_p5, %p1490_p6 }
  0x29   : > { %1500 = shalt.err (!%p1497_p10)
}
  0x2a   : > { %s1573_s19 = smov 2304   ;;  %s1574_s20 = smov 144  }
  0x2b   : > { %1382 = dma.hbm_to_vmem [thread:$0]  (!%p1679_p12), %s1806_s3, 18432, %s210_s13, [#allocation6], %s1573_s19, %s1573_s19, %s1574_s20  }
  0x2c   : > { %p1817_p2 = scmp.ne.s32.totalorder %s1815_s9, 0 }
  0x2d   : > { %p1818_p3 = scmp.eq.s32.totalorder (!%p1817_p2), %s1643_s25, 0 }
  0x2e   : > { %238 = sbr.rel (%p1817_p2) target bundleno = 548 (0x224), region = 44 }
  0x33   : > { %1544 = dma.done.wait (%p1818_p3), [#allocation3], 64   ;;  %p1819_p9 = pmov %p1818_p3 }
  0x34   : > { %p1820_p5 = pmov %p1818_p3 }
  0x35   : > { %1546 = vsyncadd (%p1819_p9), [#allocation3], 4294967232 }
  0x36   : > { %1548 = dma.done.wait (%p1820_p5), [#allocation6], 18432   ;;  %p1821_p6 = pmov %p1818_p3 }
  0x37   : > { %p271_p10 = scmp.lt.s32.totalorder %s1643_s25, 1  ;;  %v1575_v0 = vmov 0.0   ;;  %vm1576_vm0 = vmmov 0   ;;  %v1577_v1 = vmov 0   ;;  %vm287_vm1 = vcmask 1043456   ;;  %v489_v6 = vld [vmem:[#allocation5 + $0x3f8] sm:$0xff] }
  0x38   : > { %1550 = vsyncadd (%p1821_p6), [#allocation6], 4294948864  ;;  %1361 = vmatprep.subr.mxu0 %v1575_v0  ;;  %1363 = vmatprep.mubr.msk.f32.mxu0 %vm1576_vm0, %v1575_v0  ;;  %vm283_vm2 = vcmask 31744   ;;  %v276_v3 = vld [vmem:[#allocation2] sm:$0xf]  ;;  %v491_v7 = vld [vmem:[#allocation5 + $0x408] sm:$0xff] }
  0x39   : > { %s272_s29 = scalar_select %p271_p10, %s1643_s25, 1  ;;  %1439 = vset.pattern.permute.xlu0 %v1577_v1  ;;  %574 = vmatprep.mubr.f32.mxu1 %v1575_v0  ;;  %v277_v4 = vld [vmem:[%s1805_s2] sm:$0xf]  ;;  %v488_v8 = vld [vmem:[#allocation5 + $0x3f0] sm:$0xff]  ;;  %v490_v9 = vld [vmem:[#allocation5 + $0x400] sm:$0xff]  ;;  %v1578_v40 = vmov 1  }
  0x3a   : > { %280 = vperm.xlu0 %1439, %v277_v4   ;;  %v1726_v5 = vld [vmem:[%s1807_s4] sm:$0xf]  ;;  %526 = vmatprep.subr.mxu1 %v489_v6  ;;  %v471_v10 = vld [vmem:[#allocation5 + $0x368] sm:$0xff]  ;;  %v470_v12 = vld [vmem:[#allocation5 + $0x360] sm:$0xff]  ;;  %v1579_v41 = vmov 3   ;;  %v1580_v42 = vmov 2  }
  0x3b   : > { %s1341_s9 = sshll.u32 %s272_s29, 2  ;;  %527 = vmatpush1.msra.mxu1 %v488_v8  ;;  %v473_v11 = vld [vmem:[#allocation5 + $0x378] sm:$0xff]  ;;  %v472_v13 = vld [vmem:[#allocation5 + $0x370] sm:$0xff]  ;;  %v455_v15 = vld [vmem:[#allocation5 + $0x2e8] sm:$0xff]  ;;  %1440 = vset.pattern.permute.xlu1 %v1578_v40  ;;  %v1581_v43 = vmov 6   ;;  %v1582_v45 = vmov 4  }
  0x3c   : > { %s274_s12 = scalar_lea.vmem %s1803_s0, %s1341_s9  ;;  %528 = vmatprep.subr.mxu1 %v471_v10  ;;  %v453_v14 = vld [vmem:[#allocation5 + $0x2d8] sm:$0xff]  ;;  %v452_v16 = vld [vmem:[#allocation5 + $0x2d0] sm:$0xff]  ;;  %v454_v17 = vld [vmem:[#allocation5 + $0x2e0] sm:$0xff]  ;;  %1158 = vperm.xlu1 %1440, %v1726_v5   ;;  %v1583_v46 = vmov 5   ;;  %v1584_v47 = vmov 7   ;;  %v1585_v48 = vmov 8  }
  0x3d   : > { %v275_v2 = vld [vmem:[%s274_s12] sm:$0xf]  ;;  %529 = vmatpush1.msra.mxu1 %v470_v12  ;;  %v435_v18 = vld [vmem:[#allocation5 + $0x248] sm:$0xff]  ;;  %v434_v20 = vld [vmem:[#allocation5 + $0x240] sm:$0xff]  ;;  %vm506_vm3 = vcmask 523264   ;;  %s268_s19 = sand.u32 1, %s1561_s22  }
  0x3e   : > { %1362 = vmatpush3.msk.msra.mxu0 %vm287_vm1, %v275_v2  ;;  %1152 = vperm.xlu0 %1439, %v1726_v5   ;;  %v437_v19 = vld [vmem:[#allocation5 + $0x258] sm:$0xff]  ;;  %v436_v21 = vld [vmem:[#allocation5 + $0x250] sm:$0xff]  ;;  %v419_v23 = vld [vmem:[#allocation5 + $0x1c8] sm:$0xff]  ;;  %s1340_s20 = sshll.u32 %s268_s19, 3  ;;  %s1358_s26 = sshll.u32 %s1643_s25, 7 }
  0x3f   : > { %1364 = vmatmul.mubr.msk.f32.vlgmr.msra.gmra.mxu0 %vm283_vm2, %v276_v3  ;;  %597 = vmatprep.subr.mxu0 %v491_v7  ;;  %v417_v22 = vld [vmem:[#allocation5 + $0x1b8] sm:$0xff]  ;;  %v416_v24 = vld [vmem:[#allocation5 + $0x1b0] sm:$0xff]  ;;  %v418_v25 = vld [vmem:[#allocation5 + $0x1c0] sm:$0xff]  ;;  %s270_s28 = scalar_lea.vmem [#allocation7], %s1340_s20  ;;  %s1249_s11 = scalar_lea.hbm %s1809_s6, %s1358_s26 }
  0x40   : > { %598 = vmatpush1.msra.mxu0 %v490_v9  ;;  %530 = vmatprep.subr.mxu1 %v453_v14  ;;  %v399_v26 = vld [vmem:[#allocation5 + $0x128] sm:$0xff]  ;;  %v401_v27 = vld [vmem:[#allocation5 + $0x138] sm:$0xff]  ;;  %v398_v28 = vld [vmem:[#allocation5 + $0x120] sm:$0xff]  ;;  %s1251_s29 = sshll.u32 %s270_s28, 4  ;;  %s1237_s12 = scalar_lea.sflag [#allocation4], %s268_s19  ;;  %s1252_s29 = int_to_ptr.vmem [resolvable:$true] %s1251_s29 }
  0x41   : > { %599 = vmatprep.subr.mxu0 %v473_v11  ;;  %531 = vmatpush1.msra.mxu1 %v452_v16  ;;  %v400_v29 = vld [vmem:[#allocation5 + $0x130] sm:$0xff]  ;;  %v381_v30 = vld [vmem:[#allocation5 + $0x98] sm:$0xff]  ;;  %v383_v31 = vld [vmem:[#allocation5 + $0xa8] sm:$0xff]  ;;  %s1501_s13 = scalar_lea.vmem %s1252_s29, 128  ;;  %p1822_p13 = scmp.ne.s32.totalorder %s1813_s7, 0 }
  0x42   : > { %600 = vmatpush1.msra.mxu0 %v472_v13  ;;  %532 = vmatprep.subr.mxu1 %v435_v18  ;;  %v380_v32 = vld [vmem:[#allocation5 + $0x90] sm:$0xff]  ;;  %v382_v33 = vld [vmem:[#allocation5 + $0xa0] sm:$0xff]  ;;  %v363_v34 = vld [vmem:[#allocation5 + $0x8] sm:$0xff]  ;;  %p1502_p12 = scmp.ne.s32.totalorder %s1252_s29, %s1501_s13  ;;  %s1586_s14 = smov [#allocation7]  }
  0x43   : > { %601 = vmatprep.subr.mxu0 %v455_v15  ;;  %533 = vmatpush1.msra.mxu1 %v434_v20  ;;  %v365_v35 = vld [vmem:[#allocation5 + $0x18] sm:$0xff]  ;;  %v362_v36 = vld [vmem:[#allocation5] sm:$0xff]  ;;  %v364_v37 = vld [vmem:[#allocation5 + $0x10] sm:$0xff]  ;;  %s1505_s15 = sshll.u32 %s1586_s14, 4  ;;  %s1506_s15 = int_to_ptr.vmem [resolvable:$false] %s1505_s15 }
  0x44   : > { %602 = vmatpush1.msra.mxu0 %v454_v17  ;;  %534 = vmatprep.subr.mxu1 %v417_v22  ;;  %v493_v38 = vld [vmem:[#allocation5 + $0x418] sm:$0xff]  ;;  %v495_v39 = vld [vmem:[#allocation5 + $0x428] sm:$0xff]  ;;  %v492_v54 = vld [vmem:[#allocation5 + $0x410] sm:$0xff]  ;;  %p1503_p4 = pnand %p1502_p12, %p1822_p13  ;;  %s1507_s25 = scalar_lea.vmem %s1506_s15, 256 }
  0x45   : > { %603 = vmatprep.subr.mxu0 %v437_v19  ;;  %535 = vmatpush1.msra.mxu1 %v416_v24  ;;  %v1221_v44 = vld [vmem:[%s1808_s5] sm:$0xf]  ;;  %v494_v55 = vld [vmem:[#allocation5 + $0x420] sm:$0xff]  ;;  %v475_v56 = vld [vmem:[#allocation5 + $0x388] sm:$0xff]  ;;  %p1508_p8 = scmp.lt.s32.totalorder %s1252_s29, %s1506_s15  ;;  %p1509_p11 = scmp.lt.s32.totalorder %s1507_s25, %s1501_s13 }
  0x46   : > { %604 = vmatpush1.msra.mxu0 %v436_v21  ;;  %536 = vmatprep.subr.mxu1 %v399_v26  ;;  %v477_v57 = vld [vmem:[#allocation5 + $0x398] sm:$0xff]  ;;  %v474_v58 = vld [vmem:[#allocation5 + $0x380] sm:$0xff]  ;;  %v476_v59 = vld [vmem:[#allocation5 + $0x390] sm:$0xff]  ;;  %p1504_p7 = pneg %p1503_p4 }
  0x47   : > { %605 = vmatprep.subr.mxu0 %v419_v23  ;;  %537 = vmatpush1.msra.mxu1 %v398_v28  ;;  %v457_v60 = vld [vmem:[#allocation5 + $0x2f8] sm:$0xff]  ;;  %v459_v61 = vld [vmem:[#allocation5 + $0x308] sm:$0xff]  ;;  %v456_v62 = vld [vmem:[#allocation5 + $0x2f0] sm:$0xff]  ;;  %p1510_p0 = por %p1509_p11, %p1508_p8 }
  0x48   : > { %606 = vmatpush1.msra.mxu0 %v418_v25  ;;  %538 = vmatprep.subr.mxu1 %v381_v30  ;;  %v458_v63 = vld [vmem:[#allocation5 + $0x300] sm:$0xff]  ;;  %v441_v2 = vld [vmem:[#allocation5 + $0x278] sm:$0xff]  ;;  %v440_v4 = vld [vmem:[#allocation5 + $0x270] sm:$0xff] }
  0x49   : > { %607 = vmatprep.subr.mxu0 %v401_v27  ;;  %645 = vmatprep.mubr.f32.mxu0 %v1575_v0  ;;  %v438_v3 = vld [vmem:[#allocation5 + $0x260] sm:$0xff]  ;;  %v423_v6 = vld [vmem:[#allocation5 + $0x1e8] sm:$0xff]  ;;  %v420_v7 = vld [vmem:[#allocation5 + $0x1d0] sm:$0xff]  ;;  %p1511_p1 = pnand %p1510_p0, %p1504_p7 }
  0x4a   : > { %608 = vmatpush1.msra.mxu0 %v400_v29  ;;  %539 = vmatpush1.msra.mxu1 %v380_v32  ;;  %v422_v8 = vld [vmem:[#allocation5 + $0x1e0] sm:$0xff]  ;;  %v403_v9 = vld [vmem:[#allocation5 + $0x148] sm:$0xff]  ;;  %v405_v10 = vld [vmem:[#allocation5 + $0x158] sm:$0xff] }
  0x4b   : > { %609 = vmatprep.subr.mxu0 %v383_v31  ;;  %540 = vmatprep.subr.mxu1 %v363_v34  ;;  %v402_v11 = vld [vmem:[#allocation5 + $0x140] sm:$0xff]  ;;  %v404_v12 = vld [vmem:[#allocation5 + $0x150] sm:$0xff]  ;;  %v385_v13 = vld [vmem:[#allocation5 + $0xb8] sm:$0xff] }
  0x4c   : > { %610 = vmatpush1.msra.mxu0 %v382_v33  ;;  %541 = vmatpush1.msra.mxu1 %v362_v36  ;;  %v387_v14 = vld [vmem:[#allocation5 + $0xc8] sm:$0xff]  ;;  %v384_v15 = vld [vmem:[#allocation5 + $0xb0] sm:$0xff]  ;;  %v386_v16 = vld [vmem:[#allocation5 + $0xc0] sm:$0xff] }
  0x4d   : > { %611 = vmatprep.subr.mxu0 %v365_v35  ;;  %668 = vmatprep.subr.mxu1 %v493_v38  ;;  %v367_v17 = vld [vmem:[#allocation5 + $0x28] sm:$0xff]  ;;  %v369_v18 = vld [vmem:[#allocation5 + $0x38] sm:$0xff]  ;;  %v366_v19 = vld [vmem:[#allocation5 + $0x20] sm:$0xff] }
  0x4e   : > { %612 = vmatpush1.msra.mxu0 %v364_v37  ;;  %1442 = vset.pattern.permute.xlu0 %v1579_v41  ;;  %v368_v20 = vld [vmem:[#allocation5 + $0x30] sm:$0xff]  ;;  %v497_v21 = vld [vmem:[#allocation5 + $0x438] sm:$0xff]  ;;  %v499_v22 = vld [vmem:[#allocation5 + $0x448] sm:$0xff] }
  0x4f   : > { %739 = vmatprep.subr.mxu0 %v495_v39  ;;  %1174 = vperm.xlu0 %1442, %v1726_v5   ;;  %v496_v23 = vld [vmem:[#allocation5 + $0x430] sm:$0xff]  ;;  %v498_v24 = vld [vmem:[#allocation5 + $0x440] sm:$0xff]  ;;  %v479_v25 = vld [vmem:[#allocation5 + $0x3a8] sm:$0xff] }
  0x50   : > { %1441 = vset.pattern.permute.xlu1 %v1580_v42  ;;  %v481_v26 = vld [vmem:[#allocation5 + $0x3b8] sm:$0xff]  ;;  %v478_v27 = vld [vmem:[#allocation5 + $0x3a0] sm:$0xff]  ;;  %v480_v28 = vld [vmem:[#allocation5 + $0x3b0] sm:$0xff] }
  0x51   : > { %1166 = vperm.xlu1 %1441, %v1726_v5   ;;  %v461_v29 = vld [vmem:[#allocation5 + $0x318] sm:$0xff]  ;;  %v463_v30 = vld [vmem:[#allocation5 + $0x328] sm:$0xff]  ;;  %v460_v31 = vld [vmem:[#allocation5 + $0x310] sm:$0xff] }
  0x52   : > { %v462_v32 = vld [vmem:[#allocation5 + $0x320] sm:$0xff]  ;;  %v443_v33 = vld [vmem:[#allocation5 + $0x288] sm:$0xff]  ;;  %v445_v34 = vld [vmem:[#allocation5 + $0x298] sm:$0xff] }
  0x53   : > { %1445 = vset.pattern.permute.xlu0 %v1581_v43  ;;  %v442_v35 = vld [vmem:[#allocation5 + $0x280] sm:$0xff]  ;;  %v444_v36 = vld [vmem:[#allocation5 + $0x290] sm:$0xff]  ;;  %v425_v37 = vld [vmem:[#allocation5 + $0x1f8] sm:$0xff] }
  0x54   : > { %1198 = vperm.xlu0 %1445, %v1726_v5   ;;  %v427_v38 = vld [vmem:[#allocation5 + $0x208] sm:$0xff]  ;;  %v424_v39 = vld [vmem:[#allocation5 + $0x1f0] sm:$0xff]  ;;  %v426_v40 = vld [vmem:[#allocation5 + $0x200] sm:$0xff] }
  0x55   : > { %1443 = vset.pattern.permute.xlu1 %v1582_v45  ;;  %v407_v41 = vld [vmem:[#allocation5 + $0x168] sm:$0xff]  ;;  %v409_v42 = vld [vmem:[#allocation5 + $0x178] sm:$0xff]  ;;  %v406_v43 = vld [vmem:[#allocation5 + $0x160] sm:$0xff] }
  0x56   : > { %1182 = vperm.xlu1 %1443, %v1726_v5   ;;  %v389_v45 = vld [vmem:[#allocation5 + $0xd8] sm:$0xff] }
  0x58   : > { %1448 = vset.pattern.permute.xlu0 %v1577_v1  ;;  %v439_v1 = vld [vmem:[#allocation5 + $0x268] sm:$0xff] }
  0x59   : > { %1224 = vperm.xlu0 %1448, %v1221_v44   ;;  %v408_v44 = vld [vmem:[#allocation5 + $0x170] sm:$0xff] }
  0x5a   : > { %1444 = vset.pattern.permute.xlu1 %v1583_v46  ;;  %v391_v46 = vld [vmem:[#allocation5 + $0xe8] sm:$0xff] }
  0x5b   : > { %1190 = vperm.xlu1 %1444, %v1726_v5  }
  0x5f   : > { %1446 = vset.pattern.permute.xlu1 %v1584_v47  ;;  %v388_v47 = vld [vmem:[#allocation5 + $0xd0] sm:$0xff] }
  0x60   : > { %1206 = vperm.xlu1 %1446, %v1726_v5  }
  0x64   : > { %1447 = vset.pattern.permute.xlu1 %v1585_v48  ;;  %v390_v48 = vld [vmem:[#allocation5 + $0xe0] sm:$0xff] }
  0x65   : > { %1214 = vperm.xlu1 %1447, %v1726_v5   ;;  %v421_v5 = vld [vmem:[#allocation5 + $0x1d8] sm:$0xff] }
  0xb5   : > { %v281_v49 = vpop.permute.xlu0 %280 }
  0xff   : > { %v357_v50 = vpop.f32.mrf.mxu0 }
 0x100   : > { %v358_v51 = vadd.f32 %v357_v50, %v281_v49  ;;  %v371_v49 = vld [vmem:[#allocation5 + $0x48] sm:$0xff]  ;;  %v373_v50 = vld [vmem:[#allocation5 + $0x58] sm:$0xff] }
 0x101   : > { %v1365_v52 = vpop.f32.mrf.mxu0 }
 0x102   : > { %v1742_v53 = vmax.f32 %v358_v51, 0.0  ;;  %v370_v51 = vld [vmem:[#allocation5 + $0x40] sm:$0xff]  ;;  %v372_v52 = vld [vmem:[#allocation5 + $0x50] sm:$0xff] }
 0x104   : > { %1344 = vmatmul.mubr.msk.f32.vlgmr.msra.gmra.mxu1 %vm506_vm3, %v1742_v53  ;;  %1345 = vmatmul.mubr.msk.f32.vlgmr.msra.gmra.mxu0 %vm506_vm3, %v1742_v53 }
 0x105   : > { %669 = vmatpush1.msra.mxu1 %v492_v54  ;;  %740 = vmatpush1.msra.mxu0 %v494_v55  ;;  %v501_v54 = vld [vmem:[#allocation5 + $0x458] sm:$0xff]  ;;  %v503_v55 = vld [vmem:[#allocation5 + $0x468] sm:$0xff] }
 0x106   : > { %670 = vmatprep.subr.mxu1 %v475_v56  ;;  %741 = vmatprep.subr.mxu0 %v477_v57  ;;  %v500_v56 = vld [vmem:[#allocation5 + $0x450] sm:$0xff]  ;;  %v502_v57 = vld [vmem:[#allocation5 + $0x460] sm:$0xff] }
 0x107   : > { %671 = vmatpush1.msra.mxu1 %v474_v58  ;;  %742 = vmatpush1.msra.mxu0 %v476_v59  ;;  %v483_v58 = vld [vmem:[#allocation5 + $0x3c8] sm:$0xff]  ;;  %v485_v59 = vld [vmem:[#allocation5 + $0x3d8] sm:$0xff] }
 0x108   : > { %672 = vmatprep.subr.mxu1 %v457_v60  ;;  %743 = vmatprep.subr.mxu0 %v459_v61  ;;  %v482_v60 = vld [vmem:[#allocation5 + $0x3c0] sm:$0xff]  ;;  %v484_v61 = vld [vmem:[#allocation5 + $0x3d0] sm:$0xff] }
 0x109   : > { %673 = vmatpush1.msra.mxu1 %v456_v62  ;;  %744 = vmatpush1.msra.mxu0 %v458_v63  ;;  %v465_v62 = vld [vmem:[#allocation5 + $0x338] sm:$0xff]  ;;  %v467_v63 = vld [vmem:[#allocation5 + $0x348] sm:$0xff] }
 0x10a   : > { %674 = vmatprep.subr.mxu1 %v439_v1  ;;  %745 = vmatprep.subr.mxu0 %v441_v2  ;;  %v464_v1 = vld [vmem:[#allocation5 + $0x330] sm:$0xff]  ;;  %v466_v2 = vld [vmem:[#allocation5 + $0x340] sm:$0xff] }
 0x10b   : > { %675 = vmatpush1.msra.mxu1 %v438_v3  ;;  %746 = vmatpush1.msra.mxu0 %v440_v4  ;;  %v447_v3 = vld [vmem:[#allocation5 + $0x2a8] sm:$0xff]  ;;  %v449_v4 = vld [vmem:[#allocation5 + $0x2b8] sm:$0xff] }
 0x10c   : > { %676 = vmatprep.subr.mxu1 %v421_v5  ;;  %747 = vmatprep.subr.mxu0 %v423_v6  ;;  %v446_v5 = vld [vmem:[#allocation5 + $0x2a0] sm:$0xff]  ;;  %v448_v6 = vld [vmem:[#allocation5 + $0x2b0] sm:$0xff] }
 0x10d   : > { %677 = vmatpush1.msra.mxu1 %v420_v7  ;;  %748 = vmatpush1.msra.mxu0 %v422_v8  ;;  %v429_v7 = vld [vmem:[#allocation5 + $0x218] sm:$0xff]  ;;  %v431_v8 = vld [vmem:[#allocation5 + $0x228] sm:$0xff] }
 0x10e   : > { %678 = vmatprep.subr.mxu1 %v403_v9  ;;  %749 = vmatprep.subr.mxu0 %v405_v10  ;;  %v428_v9 = vld [vmem:[#allocation5 + $0x210] sm:$0xff]  ;;  %v430_v10 = vld [vmem:[#allocation5 + $0x220] sm:$0xff] }
 0x10f   : > { %679 = vmatpush1.msra.mxu1 %v402_v11  ;;  %750 = vmatpush1.msra.mxu0 %v404_v12  ;;  %v411_v11 = vld [vmem:[#allocation5 + $0x188] sm:$0xff]  ;;  %v413_v12 = vld [vmem:[#allocation5 + $0x198] sm:$0xff] }
 0x110   : > { %680 = vmatprep.subr.mxu1 %v385_v13  ;;  %751 = vmatprep.subr.mxu0 %v387_v14  ;;  %v410_v13 = vld [vmem:[#allocation5 + $0x180] sm:$0xff]  ;;  %v412_v14 = vld [vmem:[#allocation5 + $0x190] sm:$0xff] }
 0x111   : > { %681 = vmatpush1.msra.mxu1 %v384_v15  ;;  %752 = vmatpush1.msra.mxu0 %v386_v16  ;;  %v393_v15 = vld [vmem:[#allocation5 + $0xf8] sm:$0xff]  ;;  %v395_v16 = vld [vmem:[#allocation5 + $0x108] sm:$0xff] }
 0x112   : > { %682 = vmatprep.subr.mxu1 %v367_v17  ;;  %753 = vmatprep.subr.mxu0 %v369_v18  ;;  %v392_v17 = vld [vmem:[#allocation5 + $0xf0] sm:$0xff]  ;;  %v394_v18 = vld [vmem:[#allocation5 + $0x100] sm:$0xff] }
 0x113   : > { %683 = vmatpush1.msra.mxu1 %v366_v19  ;;  %716 = vmatprep.mubr.f32.mxu1 %v1575_v0  ;;  %v375_v19 = vld [vmem:[#allocation5 + $0x68] sm:$0xff] }
 0x114   : > { %754 = vmatpush1.msra.mxu0 %v368_v20  ;;  %787 = vmatprep.mubr.f32.mxu0 %v1575_v0  ;;  %v377_v20 = vld [vmem:[#allocation5 + $0x78] sm:$0xff] }
 0x115   : > { %1346 = vmatmul.mubr.msk.f32.vlgmr.msra.gmra.mxu1 %vm506_vm3, %v1742_v53  ;;  %1347 = vmatmul.mubr.msk.f32.vlgmr.msra.gmra.mxu0 %vm506_vm3, %v1742_v53 }
 0x116   : > { %810 = vmatprep.subr.mxu1 %v497_v21  ;;  %881 = vmatprep.subr.mxu0 %v499_v22  ;;  %v374_v21 = vld [vmem:[#allocation5 + $0x60] sm:$0xff]  ;;  %v376_v22 = vld [vmem:[#allocation5 + $0x70] sm:$0xff] }
 0x117   : > { %811 = vmatpush1.msra.mxu1 %v496_v23  ;;  %882 = vmatpush1.msra.mxu0 %v498_v24  ;;  %v505_v23 = vld [vmem:[#allocation5 + $0x478] sm:$0xff]  ;;  %v504_v24 = vld [vmem:[#allocation5 + $0x470] sm:$0xff] }
 0x118   : > { %812 = vmatprep.subr.mxu1 %v479_v25  ;;  %883 = vmatprep.subr.mxu0 %v481_v26  ;;  %v487_v25 = vld [vmem:[#allocation5 + $0x3e8] sm:$0xff]  ;;  %v486_v26 = vld [vmem:[#allocation5 + $0x3e0] sm:$0xff] }
 0x119   : > { %813 = vmatpush1.msra.mxu1 %v478_v27  ;;  %884 = vmatpush1.msra.mxu0 %v480_v28  ;;  %v469_v27 = vld [vmem:[#allocation5 + $0x358] sm:$0xff]  ;;  %v468_v28 = vld [vmem:[#allocation5 + $0x350] sm:$0xff] }
 0x11a   : > { %814 = vmatprep.subr.mxu1 %v461_v29  ;;  %885 = vmatprep.subr.mxu0 %v463_v30  ;;  %v451_v29 = vld [vmem:[#allocation5 + $0x2c8] sm:$0xff]  ;;  %v450_v30 = vld [vmem:[#allocation5 + $0x2c0] sm:$0xff] }
 0x11b   : > { %815 = vmatpush1.msra.mxu1 %v460_v31  ;;  %886 = vmatpush1.msra.mxu0 %v462_v32  ;;  %v433_v31 = vld [vmem:[#allocation5 + $0x238] sm:$0xff]  ;;  %v432_v32 = vld [vmem:[#allocation5 + $0x230] sm:$0xff] }
 0x11c   : > { %816 = vmatprep.subr.mxu1 %v443_v33  ;;  %887 = vmatprep.subr.mxu0 %v445_v34  ;;  %v415_v33 = vld [vmem:[#allocation5 + $0x1a8] sm:$0xff]  ;;  %v414_v34 = vld [vmem:[#allocation5 + $0x1a0] sm:$0xff] }
 0x11d   : > { %817 = vmatpush1.msra.mxu1 %v442_v35  ;;  %888 = vmatpush1.msra.mxu0 %v444_v36  ;;  %v397_v35 = vld [vmem:[#allocation5 + $0x118] sm:$0xff]  ;;  %v379_v36 = vld [vmem:[#allocation5 + $0x88] sm:$0xff] }
 0x11e   : > { %818 = vmatprep.subr.mxu1 %v425_v37  ;;  %889 = vmatprep.subr.mxu0 %v427_v38  ;;  %v378_v37 = vld [vmem:[#allocation5 + $0x80] sm:$0xff] }
 0x11f   : > { %819 = vmatpush1.msra.mxu1 %v424_v39  ;;  %890 = vmatpush1.msra.mxu0 %v426_v40  ;;  %v1159_v39 = vpop.permute.xlu1 %1158 }
 0x120   : > { %820 = vmatprep.subr.mxu1 %v407_v41  ;;  %891 = vmatprep.subr.mxu0 %v409_v42 }
 0x121   : > { %821 = vmatpush1.msra.mxu1 %v406_v43  ;;  %892 = vmatpush1.msra.mxu0 %v408_v44  ;;  %v1153_v43 = vpop.permute.xlu0 %1152 }
 0x122   : > { %822 = vmatprep.subr.mxu1 %v389_v45  ;;  %893 = vmatprep.subr.mxu0 %v391_v46 }
 0x123   : > { %823 = vmatpush1.msra.mxu1 %v388_v47  ;;  %894 = vmatpush1.msra.mxu0 %v390_v48  ;;  %v1167_v45 = vpop.permute.xlu1 %1166 }
 0x124   : > { %824 = vmatprep.subr.mxu1 %v371_v49  ;;  %895 = vmatprep.subr.mxu0 %v373_v50 }
 0x125   : > { %825 = vmatpush1.msra.mxu1 %v370_v51  ;;  %858 = vmatprep.mubr.f32.mxu1 %v1575_v0 }
 0x126   : > { %896 = vmatpush1.msra.mxu0 %v372_v52  ;;  %929 = vmatprep.mubr.f32.mxu0 %v1575_v0 }
 0x127   : > { %1348 = vmatmul.mubr.msk.f32.vlgmr.msra.gmra.mxu1 %vm506_vm3, %v1742_v53  ;;  %1349 = vmatmul.mubr.msk.f32.vlgmr.msra.gmra.mxu0 %vm506_vm3, %v1742_v53 }
 0x128   : > { %952 = vmatprep.subr.mxu1 %v501_v54  ;;  %1023 = vmatprep.subr.mxu0 %v503_v55 }
 0x129   : > { %953 = vmatpush1.msra.mxu1 %v500_v56  ;;  %1024 = vmatpush1.msra.mxu0 %v502_v57  ;;  %v1175_v57 = vpop.permute.xlu0 %1174 }
 0x12a   : > { %954 = vmatprep.subr.mxu1 %v483_v58  ;;  %1025 = vmatprep.subr.mxu0 %v485_v59 }
 0x12b   : > { %955 = vmatpush1.msra.mxu1 %v482_v60  ;;  %1026 = vmatpush1.msra.mxu0 %v484_v61 }
 0x12c   : > { %956 = vmatprep.subr.mxu1 %v465_v62  ;;  %1027 = vmatprep.subr.mxu0 %v467_v63 }
 0x12d   : > { %957 = vmatpush1.msra.mxu1 %v464_v1  ;;  %1028 = vmatpush1.msra.mxu0 %v466_v2 }
 0x12e   : > { %958 = vmatprep.subr.mxu1 %v447_v3  ;;  %1029 = vmatprep.subr.mxu0 %v449_v4 }
 0x12f   : > { %959 = vmatpush1.msra.mxu1 %v446_v5  ;;  %1030 = vmatpush1.msra.mxu0 %v448_v6 }
 0x130   : > { %960 = vmatprep.subr.mxu1 %v429_v7  ;;  %1031 = vmatprep.subr.mxu0 %v431_v8  ;;  %v1199_v8 = vpop.permute.xlu0 %1198 }
 0x131   : > { %961 = vmatpush1.msra.mxu1 %v428_v9  ;;  %1032 = vmatpush1.msra.mxu0 %v430_v10 }
 0x132   : > { %962 = vmatprep.subr.mxu1 %v411_v11  ;;  %1033 = vmatprep.subr.mxu0 %v413_v12 }
 0x133   : > { %963 = vmatpush1.msra.mxu1 %v410_v13  ;;  %1034 = vmatpush1.msra.mxu0 %v412_v14 }
 0x134   : > { %964 = vmatprep.subr.mxu1 %v393_v15  ;;  %1035 = vmatprep.subr.mxu0 %v395_v16 }
 0x135   : > { %965 = vmatpush1.msra.mxu1 %v392_v17  ;;  %1036 = vmatpush1.msra.mxu0 %v394_v18 }
 0x136   : > { %966 = vmatprep.subr.mxu1 %v375_v19  ;;  %1037 = vmatprep.subr.mxu0 %v377_v20 }
 0x137   : > { %967 = vmatpush1.msra.mxu1 %v374_v21  ;;  %1000 = vmatprep.mubr.f32.mxu1 %v1575_v0 }
 0x138   : > { %1038 = vmatpush1.msra.mxu0 %v376_v22  ;;  %1071 = vmatprep.mubr.f32.mxu0 %v1575_v0 }
 0x139   : > { %1350 = vmatmul.mubr.msk.f32.vlgmr.msra.gmra.mxu1 %vm506_vm3, %v1742_v53  ;;  %1351 = vmatmul.mubr.msk.f32.vlgmr.msra.gmra.mxu0 %vm506_vm3, %v1742_v53 }
 0x13a   : > { %1094 = vmatprep.subr.mxu1 %v505_v23  ;;  %1142 = vmatprep.mubr.f32.mxu1 %v1575_v0  ;;  %v396_v0 = vld [vmem:[#allocation5 + $0x110] sm:$0xff] }
 0x13b   : > { %1095 = vmatpush1.msra.mxu1 %v504_v24 }
 0x13c   : > { %1096 = vmatprep.subr.mxu1 %v487_v25 }
 0x13d   : > { %1097 = vmatpush1.msra.mxu1 %v486_v26 }
 0x13e   : > { %1098 = vmatprep.subr.mxu1 %v469_v27 }
 0x13f   : > { %1099 = vmatpush1.msra.mxu1 %v468_v28 }
 0x140   : > { %1100 = vmatprep.subr.mxu1 %v451_v29 }
 0x141   : > { %1101 = vmatpush1.msra.mxu1 %v450_v30 }
 0x142   : > { %1102 = vmatprep.subr.mxu1 %v433_v31 }
 0x143   : > { %1103 = vmatpush1.msra.mxu1 %v432_v32  ;;  %v1225_v32 = vpop.permute.xlu0 %1224 }
 0x144   : > { %1104 = vmatprep.subr.mxu1 %v415_v33 }
 0x145   : > { %1105 = vmatpush1.msra.mxu1 %v414_v34 }
 0x146   : > { %1106 = vmatprep.subr.mxu1 %v397_v35 }
 0x147   : > { %1107 = vmatpush1.msra.mxu1 %v396_v0 }
 0x148   : > { %1108 = vmatprep.subr.mxu1 %v379_v36 }
 0x149   : > { %1109 = vmatpush1.msra.mxu1 %v378_v37 }
 0x14a   : > { %1352 = vmatmul.mubr.msk.f32.vlgmr.msra.gmra.mxu1 %vm506_vm3, %v1742_v53  ;;  %v1183_v53 = vpop.permute.xlu1 %1182 }
 0x14e   : > { %v1191_v7 = vpop.permute.xlu1 %1190 }
 0x152   : > { %v1207_v16 = vpop.permute.xlu1 %1206 }
 0x156   : > { %v1215_v24 = vpop.permute.xlu1 %1214 }
 0x1c4   : > { %v576_v38 = vpop.f32.mrf.mxu1  ;;  %v647_v40 = vpop.f32.mrf.mxu0 }
 0x1c5   : > { %v1155_v46 = vmul.f32 %v1153_v43, %v576_v38  ;;  %v1161_v47 = vmul.f32 %v1159_v39, %v647_v40 }
 0x1c6   : > { %v578_v41 = vpop.f32.mrf.mxu1  ;;  %v649_v44 = vpop.f32.mrf.mxu0 }
 0x1c7   : > { %v1156_v49 = vmul.f32 %v1153_v43, %v578_v41  ;;  %v1162_v50 = vmul.f32 %v1159_v39, %v649_v44  ;;  %v1163_v55 = vadd.f32 %v1161_v47, %v1155_v46 }
 0x1c9   : > { %v1164_v58 = vadd.f32 %v1162_v50, %v1156_v49 }
 0x1d5   : > { %v718_v42 = vpop.f32.mrf.mxu1  ;;  %v789_v52 = vpop.f32.mrf.mxu0 }
 0x1d6   : > { %v1169_v51 = vmul.f32 %v1167_v45, %v718_v42  ;;  %v1177_v62 = vmul.f32 %v1175_v57, %v789_v52 }
 0x1d7   : > { %v720_v48 = vpop.f32.mrf.mxu1  ;;  %v791_v60 = vpop.f32.mrf.mxu0 }
 0x1d8   : > { %v1170_v56 = vmul.f32 %v1167_v45, %v720_v48  ;;  %v1171_v59 = vadd.f32 %v1169_v51, %v1163_v55  ;;  %v1178_v5 = vmul.f32 %v1175_v57, %v791_v60 }
 0x1da   : > { %v1172_v63 = vadd.f32 %v1170_v56, %v1164_v58  ;;  %v1179_v4 = vadd.f32 %v1177_v62, %v1171_v59 }
 0x1dc   : > { %v1180_v9 = vadd.f32 %v1178_v5, %v1172_v63 }
 0x1e7   : > { %v860_v54 = vpop.f32.mrf.mxu1  ;;  %v931_v2 = vpop.f32.mrf.mxu0 }
 0x1e8   : > { %v1185_v1 = vmul.f32 %v1183_v53, %v860_v54  ;;  %v1193_v13 = vmul.f32 %v1191_v7, %v931_v2 }
 0x1e9   : > { %v862_v61 = vpop.f32.mrf.mxu1  ;;  %v933_v11 = vpop.f32.mrf.mxu0 }
 0x1ea   : > { %v1186_v6 = vmul.f32 %v1183_v53, %v862_v61  ;;  %v1187_v10 = vadd.f32 %v1185_v1, %v1179_v4  ;;  %v1194_v19 = vmul.f32 %v1191_v7, %v933_v11 }
 0x1ec   : > { %v1188_v14 = vadd.f32 %v1186_v6, %v1180_v9  ;;  %v1195_v18 = vadd.f32 %v1193_v13, %v1187_v10 }
 0x1ee   : > { %v1196_v21 = vadd.f32 %v1194_v19, %v1188_v14 }
 0x1f9   : > { %v1002_v3 = vpop.f32.mrf.mxu1  ;;  %v1073_v17 = vpop.f32.mrf.mxu0 }
 0x1fa   : > { %v1201_v15 = vmul.f32 %v1199_v8, %v1002_v3  ;;  %v1209_v25 = vmul.f32 %v1207_v16, %v1073_v17 }
 0x1fb   : > { %v1004_v12 = vpop.f32.mrf.mxu1  ;;  %v1075_v23 = vpop.f32.mrf.mxu0 }
 0x1fc   : > { %v1202_v20 = vmul.f32 %v1199_v8, %v1004_v12  ;;  %v1203_v22 = vadd.f32 %v1201_v15, %v1195_v18  ;;  %v1210_v29 = vmul.f32 %v1207_v16, %v1075_v23 }
 0x1fe   : > { %v1204_v26 = vadd.f32 %v1202_v20, %v1196_v21  ;;  %v1211_v28 = vadd.f32 %v1209_v25, %v1203_v22 }
 0x200   : > { %v1212_v33 = vadd.f32 %v1210_v29, %v1204_v26 }
 0x20a   : > { %v1144_v27 = vpop.f32.mrf.mxu1 }
 0x20b   : > { %v1217_v30 = vmul.f32 %v1215_v24, %v1144_v27 }
 0x20c   : > { %v1146_v31 = vpop.f32.mrf.mxu1 }
 0x20d   : > { %v1218_v34 = vmul.f32 %v1215_v24, %v1146_v31  ;;  %v1219_v35 = vadd.f32 %v1217_v30, %v1211_v28 }
 0x20f   : > { %v1220_v0 = vadd.f32 %v1218_v34, %v1212_v33  ;;  %v1227_v36 = vadd.f32 %v1225_v32, %v1219_v35 }
 0x211   : > { %v1228_v37 = vadd.f32 %v1225_v32, %v1220_v0  ;;  %v1229_v38 = vmax.f32 %v1227_v36, 0.0 }
 0x213   : > { %v1230_v39 = vmax.f32 %v1228_v37, 0.0 }
 0x215   : > { %v1233_v40 = vcombine.low %v1229_v38, %v1230_v39 }
 0x217   : > { %1235 = vst [vmem:[%s270_s28] sm:$0xff] %v1233_v40 }
 0x218   : > { %1514 = shalt.err (!%p1511_p1)
}
 0x219   : > { %s1515_s16 = scalar_lea.hbm %s1249_s11, 128  ;;  %s1519_s19 = scalar_lea.hbm %s1809_s6, 256 }
 0x21a   : > { %p1516_p2 = scmp.ne.s32.totalorder %s1249_s11, %s1515_s16  ;;  %p1520_p5 = scmp.lt.s32.totalorder %s1249_s11, %s1809_s6 }
 0x21b   : > { %p1521_p6 = scmp.lt.s32.totalorder %s1519_s19, %s1515_s16 }
 0x21c   : > { %p1517_p3 = pnand %p1516_p2, %p1822_p13 }
 0x21d   : > { %p1522_p10 = por %p1521_p6, %p1520_p5 }
 0x21e   : > { %p1518_p9 = pneg %p1517_p3 }
 0x220   : > { %p1523_p12 = pnand %p1522_p10, %p1518_p9 }
 0x222   : > { %1526 = shalt.err (!%p1523_p12)
}
 0x223   : > { %1374 = dma.vmem_to_hbm [thread:$0]  (%p1822_p13), %s1252_s29, 128, %s1249_s11, %s1237_s12  }
 0x224 PF: > { %p1391_p4 = scmp.ge.s32.totalorder %s1569_s24, 2  ;;  %s1263_s28 = sand.u32 1, %s1557_s21  }
 0x225   : > { %p1823_p7 = scmp.ne.s32.totalorder %s1814_s8, 0  ;;  %s1264_s9 = scalar_lea.sflag [#allocation4], %s1263_s28 }
 0x227   : > { %p1384_p8 = pnand %p1391_p4, %p1823_p7 }
 0x229   : > { %p1385_p11 = pneg %p1384_p8 }
 0x22b   : > { %1552 = dma.done.wait (%p1385_p11), %s1264_s9, 128  }
 0x22c   : > { %1554 = vsyncadd (%p1385_p11), %s1264_s9, 4294967168  ;;  %p18_p0 = scmp.ge.s32.totalorder %s1647_s27, 4   ;;  %s1824_s21 = smov %s1561_s22 }
 0x22d   : > { %s1825_s22 = smov %s1565_s23  ;;  %s1826_s23 = smov %s1658_s30 }
 0x22e   : > { %s1827_s24 = smov %s1647_s27  ;;  %20 = sbr.rel (!%p18_p0) target bundleno = 5 (0x5), region = 88 }
 0x233   :  { %1269 = vsyncpa [#allocation3], 1 }
 0x234   :  { %1271 = vsyncpa [#allocation3 + $0x1], 1 }
 0x235   :  { %1272 = vsyncpa [#allocation6], 1 }
 0x236   :  { %1273 = vsyncpa [#allocation4], 1 }
 0x237   :  { %1275 = vsyncpa [#allocation4 + $0x1], 1 }

</bundles_post_ra>
